<compile_context>
chip_gen: v7x
topology: tpu7x:2x2x1
jax: 0.10.0
libtpu: 0.0.40
codegen_flags: <defaults>
</compile_context>

<pallas_src>
import functools

import jax
import jax.numpy as jnp
from jax.experimental import pallas as pl
from jax.experimental.pallas import tpu as pltpu

_HIDDEN = 64
_LANES = 128


def _round_up(x, m):
    return ((x + m - 1) // m) * m


def _cdiv(a, b):
    return (a + b - 1) // b


def critic_kernel(s_ref, w1_ref, b1_ref, w2_ref, b2_ref, o_ref):
    """One batch tile.

    s_ref : (TB, D)          state tile (f32 or bf16 — whatever the producer emitted)
    w1_ref: (D, Hp)          first-layer weight, hidden padded to Hp = 128
    b1_ref: (1, Hp)   f32    first-layer bias (padding lanes are zero)
    w2_ref: (1, Hp)   f32    value-head weight as a row (padding lanes are zero)
    b2_ref: (1, 1)    f32    value-head bias
    o_ref : (TB//128, 128) f32  lane-dense values for this batch tile
    """
    # Hidden layer on the MXU with f32 accumulation; bias + ReLU on the VPU.
    h = jnp.dot(s_ref[...], w1_ref[...], preferred_element_type=jnp.float32)
    h = jnp.maximum(h + b1_ref[...], 0.0)                         # (TB, Hp) f32

    # Value head (64 -> 1): VPU elementwise multiply + XLU lane reduce.
    # Avoids an N=1 MXU matmul and its result-FIFO relayout.
    hw = h * w2_ref[...]                                          # (TB, Hp) f32
    rows, lanes = o_ref.shape                                     # (TB//128, 128)
    # Leading-dim split (layout-trivial), then reduce over the lane axis.
    v = jnp.sum(hw.reshape(rows, lanes, hw.shape[-1]), axis=-1)   # (TB//128, 128)

    # Lane-dense, unmasked full-vreg store.
    o_ref[...] = (v + b2_ref[...]).astype(o_ref.dtype)


def _choose_batch_tile(batch, input_dim, hidden_p, block_batch, state_itemsize):
    """Pick (tile_rows, num_tiles).

    Tile is a multiple of 1024 rows when multi-tile (so the output block is a
    (>=8, 128) unmasked slab), large enough to amortize per-grid-step overhead,
    small enough to fit a conservative VMEM budget (safe on v7x's 64 MiB), and
    capped so large batches keep >= 2 grid steps for v7x's two TensorCores.
    """
    bp_single = _round_up(batch, _LANES)
    if bp_single <= 2048:
        return bp_single, 1                      # tiny batch: single tile / step

    d_padded = _round_up(max(input_dim, _LANES), _LANES)
    # Double-buffered state block + ~3 f32 Hp-wide temporaries per row.
    bytes_per_row = 2 * d_padded * state_itemsize + 3 * hidden_p * 4
    vmem_budget = 20 * 1024 * 1024               # headroom inside 32 MiB scoped / 64 MiB v7x
    tile_cap = max(1024, (vmem_budget // bytes_per_row) // 1024 * 1024)

    requested = _round_up(max(int(block_batch), 1024), 1024)
    half_batch = _round_up(_cdiv(batch, 2), 1024)   # guarantees >= 2 grid steps
    tile = max(1024, min(requested, tile_cap, half_batch))
    return tile, _cdiv(batch, tile)


def pad_critic_params(w1, b1, w2, b2, *, param_dtype=jnp.float32):
    """Pad hidden dim 64 -> 128 once at init (hoisted out of the per-call path).

    w1: (D, 64), b1: (1, 64) or (64,), w2: (64, 1) or (64,), b2: (1, 1) or ().
    Use param_dtype=bfloat16 when the state producer emits bf16.
    """
    D, H = w1.shape
    Hp = _round_up(max(H, _LANES), _LANES)
    w1p = jnp.zeros((D, Hp), param_dtype).at[:, :H].set(w1.astype(param_dtype))
    b1p = jnp.zeros((1, Hp), jnp.float32).at[:, :H].set(
        jnp.reshape(b1, (1, H)).astype(jnp.float32))
    w2p = jnp.zeros((1, Hp), jnp.float32).at[0, :H].set(
        jnp.reshape(w2, (H,)).astype(jnp.float32))
    b2p = jnp.reshape(b2, (1, 1)).astype(jnp.float32)
    return w1p, b1p, w2p, b2p


@functools.partial(jax.jit, static_argnames=("block_batch",))
def critic_forward(state, w1p, b1p, w2p, b2p, *, block_batch=8192):
    """state: (B, D); padded params from pad_critic_params(). Returns (B, 1) f32.

    `state` is streamed in the dtype it arrives in (pass bf16 from a bf16
    producer for ~2x less HBM traffic); the wrapper never copies/casts it.
    """
    B, D = state.shape
    Hp = w1p.shape[1]
    TB, num_tiles = _choose_batch_tile(B, D, Hp, block_batch, state.dtype.itemsize)
    Bp = num_tiles * TB

    # Only in the tiny single-tile regime (B <= 2048, B % 128 != 0) do we pad
    # so the block never exceeds the array dim; the large-batch streamed path
    # never copies `state` (boundary blocks handle the ragged tail).
    if B < TB:
        state = jnp.pad(state, ((0, TB - B), (0, 0)))

    # Tiny per-call cast so the MXU sees matching dtypes (no-op if they match).
    w1c = w1p.astype(state.dtype)

    itemsize = state.dtype.itemsize
    cost = pl.CostEstimate(
        flops=2 * B * D * Hp + 4 * B * Hp,
        bytes_accessed=B * D * itemsize + Bp * 4 + D * Hp * itemsize + 3 * Hp * 4,
        transcendentals=0,
    )

    out = pl.pallas_call(
        critic_kernel,
        out_shape=jax.ShapeDtypeStruct((Bp // _LANES, _LANES), jnp.float32),
        grid=(num_tiles,),
        in_specs=[
            pl.BlockSpec((TB, D), lambda i: (i, 0)),    # state streams tile by tile
            pl.BlockSpec((D, Hp), lambda i: (0, 0)),    # weights stay VMEM-resident
            pl.BlockSpec((1, Hp), lambda i: (0, 0)),
            pl.BlockSpec((1, Hp), lambda i: (0, 0)),
            pl.BlockSpec((1, 1), lambda i: (0, 0)),
        ],
        out_specs=pl.BlockSpec((TB // _LANES, _LANES), lambda i: (i, 0)),
        compiler_params=pltpu.CompilerParams(
            dimension_semantics=("parallel",),          # batch-parallel (megacore / v7x)
            vmem_limit_bytes=32 * 1024 * 1024,
        ),
        cost_estimate=cost,
    )(state, w1c, b1p, w2p, b2p)

    # Lane-dense slab -> (B, 1); any boundary-block garbage rows are row-local
    # and land at flat indices >= B, so they are sliced off here.
    return out.reshape(Bp, 1)[:B]


def init_critic_params(key, input_dim, hidden=_HIDDEN):
    """Deterministic init mimicking nn.Linear's default U(-1/sqrt(fan_in), ...)."""
    k1, k2, k3, k4 = jax.random.split(key, 4)
    lim1 = 1.0 / jnp.sqrt(jnp.float32(input_dim))
    lim2 = 1.0 / jnp.sqrt(jnp.float32(hidden))
    w1 = jax.random.uniform(k1, (input_dim, hidden), jnp.float32, -lim1, lim1)
    b1 = jax.random.uniform(k2, (1, hidden), jnp.float32, -lim1, lim1)
    w2 = jax.random.uniform(k3, (hidden, 1), jnp.float32, -lim2, lim2)
    b2 = jax.random.uniform(k4, (1, 1), jnp.float32, -lim2, lim2)
    return w1, b1, w2, b2


def critic_reference(state, w1, b1, w2, b2):
    """Pure-JAX reference at highest matmul precision."""
    hi = jax.lax.Precision.HIGHEST
    h = jnp.maximum(jnp.matmul(state, w1, precision=hi) + b1, 0.0)
    return jnp.matmul(h, w2, precision=hi) + b2


if __name__ == "__main__":
    key = jax.random.PRNGKey(0)
    k_state, k_params, k_state2 = jax.random.split(key, 3)

    # --- Small single-tile case (B=8, D=32). ---
    B, D = 8, 32
    state = jax.random.normal(k_state, (B, D), jnp.float32)
    w1, b1, w2, b2 = init_critic_params(k_params, D)
    params = pad_critic_params(w1, b1, w2, b2)

    value = jax.block_until_ready(critic_forward(state, *params))
    ref = critic_reference(state, w1, b1, w2, b2)
    assert value.shape == (B, 1)
    assert jnp.allclose(value, ref, atol=2e-2, rtol=2e-2)

    # --- Multi-tile ragged batch: 4500 rows -> 5 tiles of 1024 (tail block masked
    #     by slicing; no wrapper-side jnp.pad over the streamed tensor). ---
    B2, D2 = 4500, 48
    state2 = jax.random.normal(k_state2, (B2, D2), jnp.float32)
    w1b, b1b, w2b, b2b = init_critic_params(jax.random.PRNGKey(1), D2)
    params2 = pad_critic_params(w1b, b1b, w2b, b2b)

    v2 = jax.block_until_ready(critic_forward(state2, *params2, block_batch=1024))
    ref2 = critic_reference(state2, w1b, b1b, w2b, b2b)
    assert v2.shape == (B2, 1)
    assert jnp.allclose(v2, ref2, atol=2e-2, rtol=2e-2)

    # --- bf16 producer path: state already lives in HBM as bf16 (no in-wrapper
    #     cast of the big tensor; weights padded to bf16 once at init). ---
    state2_bf16 = state2.astype(jnp.bfloat16)          # stands in for a bf16 producer
    params2_bf16 = pad_critic_params(w1b, b1b, w2b, b2b, param_dtype=jnp.bfloat16)
    v3 = jax.block_until_ready(
        critic_forward(state2_bf16, *params2_bf16, block_batch=2048))
    ref3 = critic_reference(state2_bf16.astype(jnp.float32),
                            w1b.astype(jnp.bfloat16).astype(jnp.float32),
                            b1b, w2b, b2b)
    assert v3.shape == (B2, 1)
    assert jnp.allclose(v3, ref3, atol=2e-2, rtol=2e-2)

    print("KERNEL_OK")
</pallas_src>

<mosaic_0001>
module attributes {stable_mosaic.version = 11 : i64} {
  func.func @critic_kernel(%arg0: i32, %arg1: memref<128x32xf32, #tpu.memory_space<vmem>>, %arg2: memref<32x128xf32, #tpu.memory_space<vmem>>, %arg3: memref<1x128xf32, #tpu.memory_space<vmem>>, %arg4: memref<1x128xf32, #tpu.memory_space<vmem>>, %arg5: memref<1x1xf32, #tpu.memory_space<vmem>>, %arg6: memref<1x128xf32, #tpu.memory_space<vmem>>) attributes {dimension_semantics = [#tpu.dimension_semantics<parallel>], iteration_bounds = array<i64: 1>, scalar_prefetch = 0 : i64, scratch_operands = 0 : i64, tpu.core_type = #tpu.core_type<tc>, window_params = [{transform_indices = @transform_0, window_bounds = array<i64: 128, 32>}, {pipeline_mode = #tpu.pipeline_mode<synchronous>, transform_indices = @transform_1, window_bounds = array<i64: 32, 128>}, {pipeline_mode = #tpu.pipeline_mode<synchronous>, transform_indices = @transform_2, window_bounds = array<i64: 1, 128>}, {pipeline_mode = #tpu.pipeline_mode<synchronous>, transform_indices = @transform_3, window_bounds = array<i64: 1, 128>}, {pipeline_mode = #tpu.pipeline_mode<synchronous>, transform_indices = @transform_4, window_bounds = array<i64: 1, 1>}, {transform_indices = @transform_5, window_bounds = array<i64: 1, 128>}]} {
    %c0 = arith.constant 0 : index
    %c0_0 = arith.constant 0 : index
    %0 = vector.load %arg1[%c0, %c0_0] : memref<128x32xf32, #tpu.memory_space<vmem>>, vector<128x32xf32>
    %c0_1 = arith.constant 0 : index
    %c0_2 = arith.constant 0 : index
    %1 = vector.load %arg2[%c0_1, %c0_2] : memref<32x128xf32, #tpu.memory_space<vmem>>, vector<32x128xf32>
    %cst = arith.constant dense<0.000000e+00> : vector<128x128xf32>
    %2 = tpu.matmul %0, %1, %cst {dimension_numbers = #tpu.dot_dimension_numbers<[1], [0], [0], [1], [0, 0, 1, 1], [], []>} : vector<128x32xf32>, vector<32x128xf32>, vector<128x128xf32> -> vector<128x128xf32>
    %c0_3 = arith.constant 0 : index
    %c0_4 = arith.constant 0 : index
    %3 = vector.load %arg3[%c0_3, %c0_4] : memref<1x128xf32, #tpu.memory_space<vmem>>, vector<1x128xf32>
    %4 = vector.broadcast %3 : vector<1x128xf32> to vector<128x128xf32>
    %5 = arith.addf %2, %4 : vector<128x128xf32>
    %cst_5 = arith.constant 0.000000e+00 : f32
    %6 = vector.broadcast %cst_5 : f32 to vector<128x128xf32>
    %7 = arith.maximumf %5, %6 : vector<128x128xf32>
    %c0_6 = arith.constant 0 : index
    %c0_7 = arith.constant 0 : index
    %8 = vector.load %arg4[%c0_6, %c0_7] : memref<1x128xf32, #tpu.memory_space<vmem>>, vector<1x128xf32>
    %9 = vector.broadcast %8 : vector<1x128xf32> to vector<128x128xf32>
    %10 = arith.mulf %7, %9 : vector<128x128xf32>
    %11 = vector.shape_cast %10 : vector<128x128xf32> to vector<1x128x128xf32>
    %cst_8 = arith.constant dense<0.000000e+00> : vector<1x128xf32>
    %12 = vector.multi_reduction <add>, %11, %cst_8 [2] : vector<1x128x128xf32> to vector<1x128xf32>
    %c0_9 = arith.constant 0 : index
    %c0_10 = arith.constant 0 : index
    %13 = vector.load %arg5[%c0_9, %c0_10] : memref<1x1xf32, #tpu.memory_space<vmem>>, vector<1x1xf32>
    %14 = vector.broadcast %13 : vector<1x1xf32> to vector<1x128xf32>
    %15 = arith.addf %12, %14 : vector<1x128xf32>
    %c0_11 = arith.constant 0 : index
    %c0_12 = arith.constant 0 : index
    %16 = vector.load %arg6[%c0_11, %c0_12] : memref<1x128xf32, #tpu.memory_space<vmem>>, vector<1x128xf32>
    tpu.vector_store %arg6[%c0_11, %c0_12], %15 {strides = array<i32>} : memref<1x128xf32, #tpu.memory_space<vmem>>, vector<1x128xf32>,
    return
  }
  func.func @transform_0(%arg0: i32) -> (i32, i32) {
    %c0_i32 = arith.constant 0 : i32
    %c0_i32_0 = arith.constant 0 : i32
    return %arg0, %c0_i32 : i32, i32
  }
  func.func @transform_1(%arg0: i32) -> (i32, i32) {
    %c0_i32 = arith.constant 0 : i32
    %c0_i32_0 = arith.constant 0 : i32
    %c0_i32_1 = arith.constant 0 : i32
    return %c0_i32, %c0_i32_0 : i32, i32
  }
  func.func @transform_2(%arg0: i32) -> (i32, i32) {
    %c0_i32 = arith.constant 0 : i32
    %c0_i32_0 = arith.constant 0 : i32
    %c0_i32_1 = arith.constant 0 : i32
    return %c0_i32, %c0_i32_0 : i32, i32
  }
  func.func @transform_3(%arg0: i32) -> (i32, i32) {
    %c0_i32 = arith.constant 0 : i32
    %c0_i32_0 = arith.constant 0 : i32
    %c0_i32_1 = arith.constant 0 : i32
    return %c0_i32, %c0_i32_0 : i32, i32
  }
  func.func @transform_4(%arg0: i32) -> (i32, i32) {
    %c0_i32 = arith.constant 0 : i32
    %c0_i32_0 = arith.constant 0 : i32
    %c0_i32_1 = arith.constant 0 : i32
    return %c0_i32, %c0_i32_0 : i32, i32
  }
  func.func @transform_5(%arg0: i32) -> (i32, i32) {
    %c0_i32 = arith.constant 0 : i32
    %c0_i32_0 = arith.constant 0 : i32
    return %arg0, %c0_i32 : i32, i32
  }
}

</mosaic_0001>

<bundles_post_ra>
// kernel: critic_forward.1
= control target key start
LH: loop header
LB: loop body
LE: loop exit
PB: predicated region body
PF: predicated region fallthrough
CT: control target
= control target key end

     0   :  { %vm49_vm0 = vcmask 261120   ;;  %v558_v23 = vmov 0   ;;  %vm367_vm1 = vcmask 130112   ;;  %vm374_vm2 = vcmask 195712   ;;  %s777_s1 = inlined_call_operand.vmem [shape: f32[32,128], index: 1, kind: input, shape index: {}]   ;;  %s778_s0 = inlined_call_operand.vmem [shape: f32[128,32], index: 0, kind: input, shape index: {}]   ;;  %s779_s4 = inlined_call_operand.<no memory space> [shape: f32[1,1], index: 4, kind: input, shape index: {}]   ;;  %s780_s2 = inlined_call_operand.vmem [shape: f32[1,128], index: 2, kind: input, shape index: {}]   ;;  %s781_s3 = inlined_call_operand.vmem [shape: f32[1,128], index: 3, kind: input, shape index: {}]   ;;  %s782_s5 = inlined_call_operand.vmem [shape: f32[1,128], index: 5, kind: output, shape index: {}]  }
   0x1   :  { %v38_v0 = vld [vmem:[%s777_s1] sm:$0xff]  ;;  %v39_v1 = vld [vmem:[%s777_s1 + $0x8] sm:$0xff]  ;;  %v40_v2 = vld [vmem:[%s777_s1 + $0x10] sm:$0xff]  ;;  %v10_v22 = vstv %s779_s4  ;;  %556 = vset.pattern.permute.xlu1 %v558_v23  ;;  %557 = vset.pattern.permute.xlu0 %v558_v23  ;;  %vm381_vm3 = vcmask 261312   ;;  %vm388_vm4 = vcmask 326912   ;;  %vm395_vm5 = vcmask 392512  }
   0x2   :  { %v543_v3 = vpack.c.bf16 %v39_v1, %v38_v0  ;;  %v41_v4 = vld [vmem:[%s777_s1 + $0x18] sm:$0xff]  ;;  %v22_v5 = vld [vmem:[%s778_s0] sm:$0xff]  ;;  %v23_v8 = vld [vmem:[%s778_s0 + $0x8] sm:$0xff]  ;;  %11 = vst [vmem:[#allocation2] sm:$0x1] %v10_v22  ;;  %vm402_vm6 = vcmask 458112  }
   0x3   :  { %v547_v6 = vpack.c.bf16 %v41_v4, %v40_v2  ;;  %519 = vmatprep.mubr.msk.f32.mxu0 %vm49_vm0, %v22_v5  ;;  %v30_v7 = vld [vmem:[%s778_s0 + $0x40] sm:$0xff]  ;;  %v31_v9 = vld [vmem:[%s778_s0 + $0x48] sm:$0xff]  ;;  %v24_v10 = vld [vmem:[%s778_s0 + $0x10] sm:$0xff]  ;;  %vm409_vm7 = vcmask 523712   ;;  %vm416_vm8 = vcmask 589312   ;;  %vm423_vm9 = vcmask 654912  }
   0x4   :  { %544 = vmatprep.subr.bf16.mxu0 %v543_v3  ;;  %551 = vmatprep.subr.bf16.mxu1 %v543_v3  ;;  %v32_v11 = vld [vmem:[%s778_s0 + $0x50] sm:$0xff]  ;;  %v25_v12 = vld [vmem:[%s778_s0 + $0x18] sm:$0xff]  ;;  %v26_v14 = vld [vmem:[%s778_s0 + $0x20] sm:$0xff]  ;;  %vm430_vm10 = vcmask 720512   ;;  %vm437_vm11 = vcmask 786112   ;;  %vm444_vm12 = vcmask 851712  }
   0x5   :  { %546 = vmatpush3.bf16.msra.mxu0 %v543_v3  ;;  %553 = vmatpush3.bf16.msra.mxu1 %v543_v3  ;;  %v33_v13 = vld [vmem:[%s778_s0 + $0x58] sm:$0xff]  ;;  %v34_v15 = vld [vmem:[%s778_s0 + $0x60] sm:$0xff]  ;;  %v27_v16 = vld [vmem:[%s778_s0 + $0x28] sm:$0xff]  ;;  %vm451_vm13 = vcmask 917312   ;;  %vm458_vm14 = vcmask 982912   ;;  %vm465_vm15 = vcmask 1048512  }
   0x6   :  { %548 = vmatprep.subr.bf16.mxu0 %v547_v6  ;;  %552 = vmatprep.subr.bf16.mxu1 %v547_v6  ;;  %v35_v17 = vld [vmem:[%s778_s0 + $0x68] sm:$0xff]  ;;  %v28_v18 = vld [vmem:[%s778_s0 + $0x30] sm:$0xff]  ;;  %v29_v20 = vld [vmem:[%s778_s0 + $0x38] sm:$0xff] }
   0x7   :  { %531 = vmatprep.mubr.msk.f32.mxu1 %vm49_vm0, %v30_v7  ;;  %v36_v19 = vld [vmem:[%s778_s0 + $0x70] sm:$0xff]  ;;  %v37_v21 = vld [vmem:[%s778_s0 + $0x78] sm:$0xff]  ;;  %v671_v24 = vld [vmem:[%s780_s2] ss:$0 sm:$0xff] }
   0x8   :  { %v678_v31 = vld [vmem:[%s781_s3] ss:$0 sm:$0xff] }
   0x9   :  { %550 = vmatpush3.bf16.msra.mxu0 %v547_v6  ;;  %554 = vmatpush3.bf16.msra.mxu1 %v547_v6 }
   0xc   :  { %520 = vmatmul.mubr.msk.f32.vlgmr.msra.gmra.mrb[0].mxu0 %vm49_vm0, %v23_v8  ;;  %532 = vmatmul.mubr.msk.f32.vlgmr.msra.gmra.mrb[0].mxu1 %vm49_vm0, %v31_v9 }
   0xd   :  { %522 = vmatprep.mubr.msk.f32.mxu0 %vm49_vm0, %v24_v10  ;;  %534 = vmatprep.mubr.msk.f32.mxu1 %vm49_vm0, %v32_v11 }
  0x10   :  { %523 = vmatmul.mubr.msk.f32.gmra.mrb[2].mxu0 %vm49_vm0, %v25_v12  ;;  %535 = vmatmul.mubr.msk.f32.gmra.mrb[2].mxu1 %vm49_vm0, %v33_v13 }
  0x11   :  { %525 = vmatprep.mubr.msk.f32.mxu0 %vm49_vm0, %v26_v14  ;;  %537 = vmatprep.mubr.msk.f32.mxu1 %vm49_vm0, %v34_v15 }
  0x14   :  { %526 = vmatmul.mubr.msk.f32.gmra.mrb[4].mxu0 %vm49_vm0, %v27_v16  ;;  %538 = vmatmul.mubr.msk.f32.gmra.mrb[4].mxu1 %vm49_vm0, %v35_v17  ;;  %v314_v17 = vld [vmem:[#allocation2] sm:$0x1] }
  0x15   :  { %528 = vmatprep.mubr.msk.f32.mxu0 %vm49_vm0, %v28_v18  ;;  %540 = vmatprep.mubr.msk.f32.mxu1 %vm49_vm0, %v36_v19 }
  0x18   :  { %529 = vmatmul.mubr.msk.f32.gmra.mrb[6].mxu0 %vm49_vm0, %v29_v20  ;;  %541 = vmatmul.mubr.msk.f32.gmra.mrb[6].mxu1 %vm49_vm0, %v37_v21 }
  0xdf   :  { %v521_v25 = vpop.f32.mrb[0].mxu0  ;;  %v533_v26 = vpop.f32.mrb[0].mxu1 }
  0xe0   :  { %v170_v27 = vadd.f32 %v521_v25, %v671_v24  ;;  %v164_v28 = vpop.f32.mrb[1].mxu0  ;;  %v204_v29 = vpop.f32.mrb[1].mxu1  ;;  %v210_v44 = vadd.f32 %v533_v26, %v671_v24 }
  0xe1   :  { %v165_v30 = vadd.f32 %v671_v24, %v164_v28  ;;  %v205_v33 = vadd.f32 %v671_v24, %v204_v29 }
  0xe2   :  { %v244_v32 = vmax.f32 %v170_v27, 0.0  ;;  %v252_v56 = vmax.f32 %v210_v44, 0.0 }
  0xe3   :  { %v243_v34 = vmax.f32 %v165_v30, 0.0  ;;  %v524_v35 = vpop.f32.mrb[2].mxu0  ;;  %v536_v36 = vpop.f32.mrb[2].mxu1  ;;  %v251_v45 = vmax.f32 %v205_v33, 0.0 }
  0xe4   :  { %v180_v37 = vadd.f32 %v524_v35, %v671_v24  ;;  %v174_v38 = vpop.f32.mrb[3].mxu0  ;;  %v267_v39 = vmul.f32 %v678_v31, %v244_v32  ;;  %v220_v40 = vadd.f32 %v536_v36, %v671_v24  ;;  %v214_v41 = vpop.f32.mrb[3].mxu1  ;;  %v275_v3 = vmul.f32 %v678_v31, %v252_v56 }
  0xe5   :  { %v175_v42 = vadd.f32 %v671_v24, %v174_v38  ;;  %v266_v48 = vmul.f32 %v678_v31, %v243_v34  ;;  %v274_v58 = vmul.f32 %v678_v31, %v251_v45  ;;  %v215_v59 = vadd.f32 %v671_v24, %v214_v41 }
  0xe6   :  { %v246_v43 = vmax.f32 %v180_v37, 0.0  ;;  %284 = vadd.xlane.f32.xlu0 %v267_v39  ;;  %v254_v46 = vmax.f32 %v220_v40, 0.0  ;;  %v320_v34 = vlaneseq }
  0xe7   :  { %v527_v47 = vpop.f32.mrb[4].mxu0  ;;  %v539_v49 = vpop.f32.mrb[4].mxu1  ;;  %v245_v50 = vmax.f32 %v175_v42, 0.0  ;;  %v253_v1 = vmax.f32 %v215_v59, 0.0 }
  0xe8   :  { %v269_v51 = vmul.f32 %v678_v31, %v246_v43  ;;  %v190_v52 = vadd.f32 %v527_v47, %v671_v24  ;;  %v184_v53 = vpop.f32.mrb[5].mxu0  ;;  %v224_v54 = vpop.f32.mrb[5].mxu1  ;;  %v277_v55 = vmul.f32 %v678_v31, %v254_v46  ;;  %v230_v14 = vadd.f32 %v539_v49, %v671_v24 }
  0xe9   :  { %v268_v62 = vmul.f32 %v678_v31, %v245_v50  ;;  %v185_v4 = vadd.f32 %v671_v24, %v184_v53  ;;  %v276_v5 = vmul.f32 %v678_v31, %v253_v1  ;;  %v225_v6 = vadd.f32 %v671_v24, %v224_v54 }
  0xea   :  { %288 = vadd.xlane.f32.xlu1 %v269_v51  ;;  %v248_v57 = vmax.f32 %v190_v52, 0.0  ;;  %282 = vadd.xlane.f32.xlu0 %v266_v48  ;;  %v256_v18 = vmax.f32 %v230_v14, 0.0  ;;  %v714_v37 = vshrl.u32 %v320_v34, 7  ;;  %v717_v39 = vand.u32 127, %v320_v34 }
  0xeb   :  { %v530_v60 = vpop.f32.mrb[6].mxu0  ;;  %v542_v61 = vpop.f32.mrb[6].mxu1  ;;  %v247_v7 = vmax.f32 %v185_v4, 0.0  ;;  %v255_v8 = vmax.f32 %v225_v6, 0.0 }
  0xec   :  { %v194_v63 = vpop.f32.mrb[7].mxu0  ;;  %v234_v0 = vpop.f32.mrb[7].mxu1  ;;  %v271_v2 = vmul.f32 %v678_v31, %v248_v57  ;;  %v200_v9 = vadd.f32 %v530_v60, %v671_v24  ;;  %v240_v21 = vadd.f32 %v542_v61, %v671_v24  ;;  %v279_v23 = vmul.f32 %v678_v31, %v256_v18 }
  0xed   :  { %v270_v10 = vmul.f32 %v678_v31, %v247_v7  ;;  %v278_v12 = vmul.f32 %v678_v31, %v255_v8  ;;  %v195_v13 = vadd.f32 %v671_v24, %v194_v63  ;;  %v235_v20 = vadd.f32 %v671_v24, %v234_v0 }
  0xee   :  { %286 = vadd.xlane.f32.xlu1 %v268_v62  ;;  %298 = vadd.xlane.f32.xlu0 %v274_v58  ;;  %v250_v11 = vmax.f32 %v200_v9, 0.0  ;;  %v258_v25 = vmax.f32 %v240_v21, 0.0  ;;  %v322_v38 = vsub.s32 0, %v714_v37  ;;  %v362_v42 = vadd.s32 4294967288, %v717_v39 }
  0xef   :  { %v249_v15 = vmax.f32 %v195_v13, 0.0  ;;  %v257_v22 = vmax.f32 %v235_v20, 0.0  ;;  %v369_v44 = vadd.s32 4294967280, %v717_v39  ;;  %v360_v47 = vsub.s32 %v717_v39, %v714_v37 }
  0xf0   :  { %v273_v16 = vmul.f32 %v678_v31, %v250_v11  ;;  %v281_v27 = vmul.f32 %v678_v31, %v258_v25  ;;  %v365_v48 = vsub.s32 %v362_v42, %v714_v37  ;;  %v376_v53 = vadd.s32 4294967272, %v717_v39 }
  0xf1   :  { %v272_v19 = vmul.f32 %v678_v31, %v249_v15  ;;  %v280_v26 = vmul.f32 %v678_v31, %v257_v22  ;;  %v372_v50 = vsub.s32 %v369_v44, %v714_v37  ;;  %v390_v62 = vadd.s32 4294967256, %v717_v39 }
  0xf2   :  { %292 = vadd.xlane.f32.xlu1 %v271_v2  ;;  %300 = vadd.xlane.f32.xlu0 %v275_v3  ;;  %v379_v59 = vsub.s32 %v376_v53, %v714_v37  ;;  %v397_v63 = vadd.s32 4294967248, %v717_v39  ;;  %v404_v8 = vadd.s32 4294967240, %v717_v39  ;;  %v411_v11 = vadd.s32 4294967232, %v717_v39 }
  0xf3   :  { %v393_v4 = vsub.s32 %v390_v62, %v714_v37  ;;  %v425_v22 = vadd.s32 4294967216, %v717_v39 }
  0xf4   :  { %v407_v14 = vsub.s32 %v404_v8, %v714_v37  ;;  %v414_v20 = vsub.s32 %v411_v11, %v714_v37 }
  0xf5   :  { %v428_v34 = vsub.s32 %v425_v22, %v714_v37 }
  0xf6   :  { %302 = vadd.xlane.f32.xlu0 %v276_v5  ;;  %v400_v5 = vsub.s32 %v397_v63, %v714_v37 }
  0xfa   :  { %290 = vadd.xlane.f32.xlu0 %v270_v10 }
  0xfe   :  { %306 = vadd.xlane.f32.xlu0 %v278_v12 }
 0x102   :  { %296 = vadd.xlane.f32.xlu0 %v273_v16 }
 0x103   :  { %317 = vperm.xlu1 %556, %v314_v17   ;;  %v418_v17 = vadd.s32 4294967224, %v717_v39 }
 0x106   :  { %294 = vadd.xlane.f32.xlu0 %v272_v19 }
 0x10a   :  { %308 = vadd.xlane.f32.xlu0 %v279_v23 }
 0x10e   :  { %310 = vadd.xlane.f32.xlu0 %v280_v26  ;;  %v421_v26 = vsub.s32 %v418_v17, %v714_v37 }
 0x112   :  { %312 = vadd.xlane.f32.xlu0 %v281_v27 }
 0x127   :  { %304 = vadd.xlane.f32.xlu1 %v277_v55  ;;  %v383_v55 = vadd.s32 4294967264, %v717_v39 }
 0x129   :  { %v386_v60 = vsub.s32 %v383_v55, %v714_v37 }
 0x173   :  { %v285_v28 = vpop.xlane.xlu0 %284 }
 0x177   :  { %v283_v29 = vpop.xlane.xlu0 %282  ;;  %v289_v32 = vpop.xlane.xlu1 %288 }
 0x17b   :  { %v299_v30 = vpop.xlane.xlu0 %298  ;;  %v287_v24 = vpop.xlane.xlu1 %286 }
 0x17f   :  { %v710_v33 = vpop.xlane.xlu0 %300  ;;  %v293_v36 = vpop.xlane.xlu1 %292 }
 0x183   :  { %v712_v35 = vpop.xlane.xlu0 %302  ;;  %v318_v40 = vpop.permute.xlu1 %317 }
 0x184   :  { %v719_v41 = vrot.slane %v318_v40, %v322_v38  ;;  %v460_v40 = vadd.s32 4294967176, %v717_v39 }
 0x186   :  { %v324_v45 = vadd.f32 %v719_v41, %v283_v29  ;;  %v325_v46 = vadd.f32 %v719_v41, %v285_v28  ;;  %v326_v49 = vadd.f32 %v719_v41, %v287_v24  ;;  %v327_v57 = vadd.f32 %v719_v41, %v289_v32 }
 0x187   :  { %v291_v31 = vpop.xlane.xlu0 %290  ;;  %v329_v9 = vadd.f32 %v719_v41, %v293_v36  ;;  %v332_v19 = vadd.f32 %v719_v41, %v299_v30  ;;  %v432_v28 = vadd.s32 4294967208, %v717_v39  ;;  %v333_v29 = vadd.f32 %v719_v41, %v710_v33 }
 0x188   :  { %v361_v51 = vrot.slane %v324_v45, %v360_v47  ;;  %v366_v52 = vrot.slane %v325_v46, %v365_v48  ;;  %v373_v56 = vrot.slane %v326_v49, %v372_v50  ;;  %v328_v61 = vadd.f32 %v719_v41, %v291_v31 }
 0x189   :  { %v380_v2 = vrot.slane %v327_v57, %v379_v59  ;;  %v394_v16 = vrot.slane %v329_v9, %v393_v4  ;;  %v439_v32 = vadd.s32 4294967200, %v717_v39  ;;  %v415_v30 = vrot.slane %v332_v19, %v414_v20 }
 0x18a   :  { %v368_v58 = vsel %vm367_vm1, %v366_v52, %v361_v51  ;;  %v387_v3 = vrot.slane %v328_v61, %v386_v60  ;;  %v446_v24 = vadd.s32 4294967192, %v717_v39  ;;  %v334_v36 = vadd.f32 %v719_v41, %v712_v35 }
 0x18b   :  { %v722_v43 = vpop.xlane.xlu0 %306  ;;  %v375_v1 = vsel %vm374_vm2, %v373_v56, %v368_v58  ;;  %v453_v31 = vadd.s32 4294967184, %v717_v39  ;;  %v435_v42 = vsub.s32 %v432_v28, %v714_v37  ;;  %v422_v44 = vrot.slane %v333_v29, %v421_v26 }
 0x18c   :  { %v382_v7 = vsel %vm381_vm3, %v380_v2, %v375_v1  ;;  %v442_v33 = vsub.s32 %v439_v32, %v714_v37  ;;  %v336_v45 = vadd.f32 %v719_v41, %v722_v43  ;;  %v449_v46 = vsub.s32 %v446_v24, %v714_v37 }
 0x18d   :  { %v389_v10 = vsel %vm388_vm4, %v387_v3, %v382_v7  ;;  %v429_v51 = vrot.slane %v334_v36, %v428_v34  ;;  %v456_v39 = vsub.s32 %v453_v31, %v714_v37  ;;  %v463_v53 = vsub.s32 %v460_v40, %v714_v37 }
 0x18e   :  { %v396_v18 = vsel %vm395_vm5, %v394_v16, %v389_v10  ;;  %v443_v55 = vrot.slane %v336_v45, %v442_v33 }
 0x18f   :  { %v297_v54 = vpop.xlane.xlu0 %296 }
 0x190   :  { %v331_v15 = vadd.f32 %v719_v41, %v297_v54 }
 0x192   :  { %v408_v23 = vrot.slane %v331_v15, %v407_v14 }
 0x193   :  { %v295_v0 = vpop.xlane.xlu0 %294 }
 0x194   :  { %v330_v6 = vadd.f32 %v719_v41, %v295_v0 }
 0x196   :  { %v401_v12 = vrot.slane %v330_v6, %v400_v5 }
 0x197   :  { %v309_v13 = vpop.xlane.xlu0 %308 }
 0x198   :  { %v403_v21 = vsel %vm402_vm6, %v401_v12, %v396_v18  ;;  %v337_v35 = vadd.f32 %v719_v41, %v309_v13 }
 0x199   :  { %v410_v27 = vsel %vm409_vm7, %v408_v23, %v403_v21 }
 0x19a   :  { %v417_v38 = vsel %vm416_vm8, %v415_v30, %v410_v27  ;;  %v450_v57 = vrot.slane %v337_v35, %v449_v46 }
 0x19b   :  { %v311_v25 = vpop.xlane.xlu0 %310  ;;  %v424_v50 = vsel %vm423_vm9, %v422_v44, %v417_v38 }
 0x19c   :  { %v338_v52 = vadd.f32 %v719_v41, %v311_v25  ;;  %v431_v56 = vsel %vm430_vm10, %v429_v51, %v424_v50 }
 0x19e   :  { %v457_v59 = vrot.slane %v338_v52, %v456_v39 }
 0x19f   :  { %v313_v47 = vpop.xlane.xlu0 %312 }
 0x1a0   :  { %v339_v43 = vadd.f32 %v719_v41, %v313_v47 }
 0x1a2   :  { %v464_v61 = vrot.slane %v339_v43, %v463_v53 }
 0x1b4   :  { %v305_v48 = vpop.xlane.xlu1 %304 }
 0x1b5   :  { %v335_v49 = vadd.f32 %v719_v41, %v305_v48 }
 0x1b7   :  { %v436_v54 = vrot.slane %v335_v49, %v435_v42 }
 0x1b9   :  { %v438_v58 = vsel %vm437_vm11, %v436_v54, %v431_v56 }
 0x1ba   :  { %v445_v60 = vsel %vm444_vm12, %v443_v55, %v438_v58 }
 0x1bb   :  { %v452_v62 = vsel %vm451_vm13, %v450_v57, %v445_v60 }
 0x1bc   :  { %v459_v63 = vsel %vm458_vm14, %v457_v59, %v452_v62 }
 0x1bd   :  { %v466_v0 = vsel %vm465_vm15, %v464_v61, %v459_v63 }
 0x1be   :  { %468 = vst [vmem:[%s782_s5] sm:$0x1] %v466_v0 }

</bundles_post_ra>
